<compile_context>
chip_gen: v6e
topology: v6e:2x2x1
jax: 0.10.0
libtpu: 0.0.40
codegen_flags: <defaults>
</compile_context>

<pallas_src>
import numpy as np

import jax
import jax.numpy as jnp
from jax.experimental import pallas as pl
from jax.experimental.pallas import tpu as pltpu


def _round_up(a, m):
    return ((a + m - 1) // m) * m


def _pad2d(a, rows, cols):
    pr, pc = rows - a.shape[0], cols - a.shape[1]
    if pr or pc:
        a = jnp.pad(a, ((0, pr), (0, pc)))
    return a


def _device_defaults():
    """Per-generation tile / VMEM defaults (conservative if unknown)."""
    try:
        kind = jax.devices()[0].device_kind.lower()
    except Exception:
        kind = ""
    if "v7" in kind:
        # 64 MiB physical VMEM per TC -> leave headroom for Mosaic scratch.
        return dict(tm=384, tn=512, vmem_limit=56 * 1024 * 1024, rank_align=256)
    if "v5" in kind:
        return dict(tm=512, tn=512, vmem_limit=100 * 1024 * 1024, rank_align=128)
    # v6e / unknown: 128 MiB physical VMEM, 2x256 MXU.
    return dict(tm=512, tn=512, vmem_limit=100 * 1024 * 1024, rank_align=256)


# ---------------------------------------------------------------------------
# Kernel
# ---------------------------------------------------------------------------
def _compressed_linear_kernel(x_ref, v_ref, ut_ref, b_ref, o_ref, t_ref):
    # x : (tm, in_p)   bf16     V : (in_p, r_p)  bf16  (single-buffered)
    # Ut: (r_p, tn)    bf16     b : (1, tn)      f32
    # o : (tm, tn)              t : (tm, r_p)    bf16 scratch (lives across j)
    #
    # INVARIANT: the j grid axis is "arbitrary" (sequential, j == 0 runs first
    # for every i); the scratch t_ref is only initialized under j == 0.
    j = pl.program_id(1)

    @pl.when(j == 0)
    def _():
        # First matmul computed once per row tile, reused for all out tiles.
        # Single f32 -> bf16 downcast here (not once per output tile).
        t_ref[...] = jnp.dot(
            x_ref[...], v_ref[...], preferred_element_type=jnp.float32
        ).astype(t_ref.dtype)

    out = jnp.dot(t_ref[...], ut_ref[...], preferred_element_type=jnp.float32)
    o_ref[...] = (out + b_ref[...]).astype(o_ref.dtype)  # f32 epilogue


# ---------------------------------------------------------------------------
# One-time parameter preparation (cacheable; mirrors module __init__ work).
# ---------------------------------------------------------------------------
def prepare_compressed_linear_params(U, S, Vt, bias=None, *, tn=None,
                                     compute_dtype=jnp.bfloat16,
                                     rank_align=None):
    defaults = _device_defaults()
    tn = defaults["tn"] if tn is None else tn
    rank_align = defaults["rank_align"] if rank_align is None else rank_align

    out_features, rank = U.shape
    in_features = Vt.shape[1]

    V = Vt.T.astype(jnp.float32)                                     # (in, r)
    Ut = S[:, None].astype(jnp.float32) * U.T.astype(jnp.float32)    # (r, out)
    b_row = (bias if bias is not None
             else jnp.zeros((out_features,), jnp.float32))
    b_row = b_row.astype(jnp.float32).reshape(1, out_features)

    in_p = _round_up(in_features, 128)
    # 256-align rank for the 2x256 MXU on v6e/v7x unless rank is tiny.
    rank_p = _round_up(rank, rank_align if rank >= 192 else 128)
    out_p = _round_up(out_features, 128)
    tn = _round_up(min(tn, out_p), 128)
    out_pad = _round_up(out_p, tn)

    v_p = _pad2d(V, in_p, rank_p).astype(compute_dtype)
    ut_p = _pad2d(Ut, rank_p, out_pad).astype(compute_dtype)
    b_p = _pad2d(b_row, 1, out_pad)                                  # stays f32

    return dict(v_p=v_p, ut_p=ut_p, b_p=b_p,
                in_features=in_features, out_features=out_features,
                in_p=in_p, rank_p=rank_p, out_pad=out_pad, tn=tn,
                compute_dtype=compute_dtype)


# ---------------------------------------------------------------------------
# Forward
# ---------------------------------------------------------------------------
def compressed_linear_pallas(x, params, *, tm=None, vmem_limit_bytes=None):
    """x: (..., in_features) -> (..., out_features)."""
    defaults = _device_defaults()
    tm = defaults["tm"] if tm is None else tm
    vmem_limit_bytes = (defaults["vmem_limit"] if vmem_limit_bytes is None
                        else vmem_limit_bytes)

    in_features = params["in_features"]
    out_features = params["out_features"]
    in_p = params["in_p"]
    rank_p = params["rank_p"]
    out_pad = params["out_pad"]
    tn = params["tn"]
    compute_dtype = params["compute_dtype"]
    v_p, ut_p, b_p = params["v_p"], params["ut_p"], params["b_p"]

    out_dtype = x.dtype
    lead_shape = x.shape[:-1]
    x2d = x.reshape(-1, in_features)
    M = x2d.shape[0]

    cbytes = np.dtype(compute_dtype).itemsize
    obytes = np.dtype(out_dtype).itemsize

    # Row tile: multiple of 16 (bf16 sublane packing).  Shrink until the
    # double-buffered working set fits the VMEM limit (with ~2 MiB slack).
    tm = _round_up(min(tm, _round_up(M, 16)), 16)

    def vmem_budget(tm_):
        return (2 * tm_ * in_p * cbytes          # x  (double-buffered)
                + in_p * rank_p * cbytes         # V  (single-buffered)
                + 2 * rank_p * tn * cbytes       # Ut (double-buffered)
                + 2 * tn * 4                     # bias
                + tm_ * rank_p * cbytes          # t scratch (bf16)
                + 2 * tm_ * tn * obytes)         # out (double-buffered)

    while tm > 16 and vmem_budget(tm) > vmem_limit_bytes - (2 << 20):
        tm = max(16, _round_up(tm // 2, 16))

    m_pad = _round_up(M, tm)
    grid = (m_pad // tm, out_pad // tn)

    # Pad activations in their own dtype; single cast to compute dtype.
    x_p = _pad2d(x2d, m_pad, in_p).astype(compute_dtype)

    flops = 2 * m_pad * in_p * rank_p + 2 * m_pad * rank_p * out_pad
    bytes_accessed = (m_pad * in_p * cbytes                      # x
                      + in_p * rank_p * cbytes                   # V
                      + (m_pad // tm) * rank_p * out_pad * cbytes  # Ut re-stream
                      + out_pad * 4                              # bias
                      + m_pad * out_pad * obytes)                # out

    out2d_p = pl.pallas_call(
        _compressed_linear_kernel,
        out_shape=jax.ShapeDtypeStruct((m_pad, out_pad), out_dtype),
        grid_spec=pltpu.PrefetchScalarGridSpec(
            num_scalar_prefetch=0,
            grid=grid,
            in_specs=[
                pl.BlockSpec((tm, in_p), lambda i, j: (i, 0)),
                # V's block index is constant -> single-buffer it; the revisit
                # optimization already skips re-DMA of an unchanged block.
                pl.BlockSpec((in_p, rank_p), lambda i, j: (0, 0),
                             pipeline_mode=pl.Buffered(1)),
                pl.BlockSpec((rank_p, tn), lambda i, j: (0, j)),
                pl.BlockSpec((1, tn), lambda i, j: (0, j)),
            ],
            out_specs=pl.BlockSpec((tm, tn), lambda i, j: (i, j)),
            scratch_shapes=[pltpu.VMEM((tm, rank_p), compute_dtype)],
        ),
        compiler_params=pltpu.CompilerParams(
            # j MUST stay "arbitrary": the t scratch is initialized at j == 0.
            dimension_semantics=("parallel", "arbitrary"),
            vmem_limit_bytes=vmem_limit_bytes,
        ),
        cost_estimate=pl.CostEstimate(
            flops=flops, transcendentals=0, bytes_accessed=bytes_accessed),
    )(x_p, v_p, ut_p, b_p)

    out2d = out2d_p[:M, :out_features]
    return out2d.reshape(*lead_shape, out_features)


def compressed_linear(x, U, S, Vt, bias=None, **kwargs):
    """Convenience one-shot path (prepares params then runs the kernel)."""
    params = prepare_compressed_linear_params(U, S, Vt, bias)
    return compressed_linear_pallas(x, params, **kwargs)


# ---------------------------------------------------------------------------
# Parameter setup (mirrors svd_compress_weight / compute_optimal_rank).
# ---------------------------------------------------------------------------
def compute_optimal_rank(S, energy_threshold=0.9):
    total = jnp.sum(S ** 2)
    retained = jnp.cumsum(S ** 2) / total
    return int(jnp.argmax(retained >= energy_threshold)) + 1


def svd_compress_weight(weight, rank=None, energy_threshold=0.9):
    U, S, Vt = jnp.linalg.svd(weight.astype(jnp.float32), full_matrices=False)
    if rank is None:
        rank = compute_optimal_rank(S, energy_threshold)
    return U[:, :rank], S[:rank], Vt[:rank, :]


if __name__ == "__main__":
    key = jax.random.PRNGKey(0)
    k_w, k_b, k_x = jax.random.split(key, 3)

    batch, seq = 2, 8
    in_features, out_features = 32, 24

    weight = jax.random.normal(k_w, (out_features, in_features), jnp.float32)
    bias = jax.random.normal(k_b, (out_features,), jnp.float32)
    x = jax.random.normal(k_x, (batch, seq, in_features), jnp.float32)

    # SVD compression (parameter setup, plain JAX glue).
    U, S, Vt = svd_compress_weight(weight, rank=None, energy_threshold=0.9)

    # One-time cacheable parameter prep, then the Pallas forward.
    params = prepare_compressed_linear_params(U, S, Vt, bias)
    out = compressed_linear_pallas(x, params)
    out = jax.block_until_ready(out)

    # Reference check against the exact PyTorch forward semantics (f32).
    ref = ((x @ Vt.T) * S) @ U.T + bias
    assert out.shape == (batch, seq, out_features)
    # bf16 MXU operands with f32 accumulation -> relative-error check.
    rel = float(jnp.max(jnp.abs(out - ref)) / (jnp.max(jnp.abs(ref)) + 1e-6))
    assert rel < 5e-2, f"mismatch vs reference, rel err = {rel}"

    print("KERNEL_OK")
</pallas_src>

<mosaic_0001>
module attributes {stable_mosaic.version = 11 : i64} {
  func.func @_compressed_linear_kernel(%arg0: i32, %arg1: i32, %arg2: memref<16x128xbf16, #tpu.memory_space<vmem>>, %arg3: memref<128x128xbf16, #tpu.memory_space<vmem>>, %arg4: memref<128x128xbf16, #tpu.memory_space<vmem>>, %arg5: memref<1x128xf32, #tpu.memory_space<vmem>>, %arg6: memref<16x128xf32, #tpu.memory_space<vmem>>, %arg7: memref<16x128xbf16, #tpu.memory_space<vmem>>) attributes {dimension_semantics = [#tpu.dimension_semantics<parallel>, #tpu.dimension_semantics<arbitrary>], iteration_bounds = array<i64: 1, 1>, scalar_prefetch = 0 : i64, scratch_operands = 1 : i64, tpu.core_type = #tpu.core_type<tc>, window_params = [{transform_indices = @transform_0, window_bounds = array<i64: 16, 128>}, {pipeline_mode = #tpu.pipeline_mode<synchronous>, transform_indices = @transform_1, window_bounds = array<i64: 128, 128>}, {transform_indices = @transform_2, window_bounds = array<i64: 128, 128>}, {transform_indices = @transform_3, window_bounds = array<i64: 1, 128>}, {transform_indices = @transform_4, window_bounds = array<i64: 16, 128>}]} {
    %c0_i32 = arith.constant 0 : i32
    %0 = arith.cmpi eq, %arg1, %c0_i32 : i32
    %1 = arith.extui %0 : i1 to i32
    %c0_i32_0 = arith.constant 0 : i32
    %2 = arith.cmpi ne, %1, %c0_i32_0 : i32
    scf.if %2 {
      %c0_8 = arith.constant 0 : index
      %c0_9 = arith.constant 0 : index
      %10 = vector.load %arg2[%c0_8, %c0_9] : memref<16x128xbf16, #tpu.memory_space<vmem>>, vector<16x128xbf16>
      %c0_10 = arith.constant 0 : index
      %c0_11 = arith.constant 0 : index
      %11 = vector.load %arg3[%c0_10, %c0_11] : memref<128x128xbf16, #tpu.memory_space<vmem>>, vector<128x128xbf16>
      %cst_12 = arith.constant dense<0.000000e+00> : vector<16x128xf32>
      %12 = tpu.matmul %10, %11, %cst_12 {dimension_numbers = #tpu.dot_dimension_numbers<[1], [0], [0], [1], [0, 0, 1, 1], [], []>} : vector<16x128xbf16>, vector<128x128xbf16>, vector<16x128xf32> -> vector<16x128xf32>
      %13 = arith.truncf %12 : vector<16x128xf32> to vector<16x128xbf16>
      %c0_13 = arith.constant 0 : index
      %c0_14 = arith.constant 0 : index
      %14 = vector.load %arg7[%c0_13, %c0_14] : memref<16x128xbf16, #tpu.memory_space<vmem>>, vector<16x128xbf16>
      tpu.vector_store %arg7[%c0_13, %c0_14], %13 {strides = array<i32>} : memref<16x128xbf16, #tpu.memory_space<vmem>>, vector<16x128xbf16>,
    } else {
    }
    %c0 = arith.constant 0 : index
    %c0_1 = arith.constant 0 : index
    %3 = vector.load %arg7[%c0, %c0_1] : memref<16x128xbf16, #tpu.memory_space<vmem>>, vector<16x128xbf16>
    %c0_2 = arith.constant 0 : index
    %c0_3 = arith.constant 0 : index
    %4 = vector.load %arg4[%c0_2, %c0_3] : memref<128x128xbf16, #tpu.memory_space<vmem>>, vector<128x128xbf16>
    %cst = arith.constant dense<0.000000e+00> : vector<16x128xf32>
    %5 = tpu.matmul %3, %4, %cst {dimension_numbers = #tpu.dot_dimension_numbers<[1], [0], [0], [1], [0, 0, 1, 1], [], []>} : vector<16x128xbf16>, vector<128x128xbf16>, vector<16x128xf32> -> vector<16x128xf32>
    %c0_4 = arith.constant 0 : index
    %c0_5 = arith.constant 0 : index
    %6 = vector.load %arg5[%c0_4, %c0_5] : memref<1x128xf32, #tpu.memory_space<vmem>>, vector<1x128xf32>
    %7 = vector.broadcast %6 : vector<1x128xf32> to vector<16x128xf32>
    %8 = arith.addf %5, %7 : vector<16x128xf32>
    %c0_6 = arith.constant 0 : index
    %c0_7 = arith.constant 0 : index
    %9 = vector.load %arg6[%c0_6, %c0_7] : memref<16x128xf32, #tpu.memory_space<vmem>>, vector<16x128xf32>
    tpu.vector_store %arg6[%c0_6, %c0_7], %8 {strides = array<i32>} : memref<16x128xf32, #tpu.memory_space<vmem>>, vector<16x128xf32>,
    return
  }
  func.func @transform_0(%arg0: i32, %arg1: i32) -> (i32, i32) {
    %c0_i32 = arith.constant 0 : i32
    %c0_i32_0 = arith.constant 0 : i32
    return %arg0, %c0_i32 : i32, i32
  }
  func.func @transform_1(%arg0: i32, %arg1: i32) -> (i32, i32) {
    %c0_i32 = arith.constant 0 : i32
    %c0_i32_0 = arith.constant 0 : i32
    %c0_i32_1 = arith.constant 0 : i32
    return %c0_i32, %c0_i32_0 : i32, i32
  }
  func.func @transform_2(%arg0: i32, %arg1: i32) -> (i32, i32) {
    %c0_i32 = arith.constant 0 : i32
    %c0_i32_0 = arith.constant 0 : i32
    return %c0_i32, %arg1 : i32, i32
  }
  func.func @transform_3(%arg0: i32, %arg1: i32) -> (i32, i32) {
    %c0_i32 = arith.constant 0 : i32
    %c0_i32_0 = arith.constant 0 : i32
    return %c0_i32, %arg1 : i32, i32
  }
  func.func @transform_4(%arg0: i32, %arg1: i32) -> (i32, i32) {
    %c0_i32 = arith.constant 0 : i32
    return %arg0, %arg1 : i32, i32
  }
}

</mosaic_0001>

<bundles_post_ra>
// kernel: tpu_custom_call.1
= control target key start
LH: loop header
LB: loop body
LE: loop exit
PB: predicated region body
PF: predicated region fallthrough
CT: control target
= control target key end

     0   :  { %9 = vsyncpa [#allocation4], 0  ;;  %s577_s0 = inlined_call_operand.hbm [shape: bf16[16,128], index: 0, kind: input, shape index: {}]   ;;  %s578_s1 = inlined_call_operand.hbm [shape: bf16[128,128], index: 1, kind: input, shape index: {}]   ;;  %s579_s2 = inlined_call_operand.hbm [shape: bf16[128,128], index: 2, kind: input, shape index: {}]   ;;  %s580_s3 = inlined_call_operand.vmem [shape: f32[1,128], index: 3, kind: input, shape index: {}]   ;;  %s581_s4 = inlined_call_operand.hbm [shape: f32[16,128], index: 4, kind: output, shape index: {}]  }
   0x1   :  { %10 = vsyncpa [#allocation7], 0 }
   0x2   :  { %11 = vsyncpa [#allocation5], 0  ;;  %s527_s15 = smov [#allocation6]   ;;  %s528_s17 = smov [#allocation3]  }
   0x3   :  { %s29_s16 = sshll.u32 %s527_s15, 4  ;;  %s17_s18 = sshll.u32 %s528_s17, 4  ;;  %s30_s16 = int_to_ptr.vmem [resolvable:$true] %s29_s16  ;;  %s18_s18 = int_to_ptr.vmem [resolvable:$true] %s17_s18 }
   0x4   :  { %s449_s19 = scalar_lea.vmem %s30_s16, 1024  ;;  %p454_p1 = scmp.lt.s32.totalorder %s30_s16, %s30_s16 }
   0x5   :  { %p450_p0 = scmp.ne.s32.totalorder %s30_s16, %s449_s19  ;;  %p455_p2 = scmp.lt.s32.totalorder %s449_s19, %s449_s19 }
   0x7   :  { %p456_p3 = por %p455_p2, %p454_p1 }
   0x9   :  { %p457_p4 = pnand %p456_p3, %p450_p0 }
   0xb   :  { %460 = shalt.err (!%p457_p4)
}
   0xc   :  { %s529_s20 = smov 64   ;;  %s530_s21 = smov 4  }
   0xd   :  { %35 = dma.hbm_to_vmem [thread:$0]  %s578_s1, 1024, %s30_s16, [#allocation7], %s529_s20, %s529_s20, %s530_s21  }
   0xe   :  { %s469_s24 = scalar_lea.vmem %s18_s18, 128  ;;  %p474_p6 = scmp.lt.s32.totalorder %s18_s18, %s18_s18 }
   0xf   :  { %p470_p5 = scmp.ne.s32.totalorder %s18_s18, %s469_s24  ;;  %p475_p7 = scmp.lt.s32.totalorder %s469_s24, %s469_s24 }
  0x11   :  { %p476_p8 = por %p475_p7, %p474_p6 }
  0x13   :  { %p477_p9 = pnand %p476_p8, %p470_p5 }
  0x15   :  { %480 = shalt.err (!%p477_p9)
}
  0x16   :  { %23 = dma.hbm_to_vmem [thread:$0]  %s577_s0, 128, %s18_s18, [#allocation4], %s529_s20, %s529_s20, %s530_s21  }
  0x17   :  { %s531_s27 = smov [#allocation8]  }
  0x18   :  { %s41_s28 = sshll.u32 %s531_s27, 4  ;;  %s42_s28 = int_to_ptr.vmem [resolvable:$true] %s41_s28 }
  0x19   :  { %s489_s29 = scalar_lea.vmem %s42_s28, 1024  ;;  %p494_p11 = scmp.lt.s32.totalorder %s42_s28, %s42_s28 }
  0x1a   :  { %p490_p10 = scmp.ne.s32.totalorder %s42_s28, %s489_s29  ;;  %p495_p12 = scmp.lt.s32.totalorder %s489_s29, %s489_s29 }
  0x1c   :  { %p496_p13 = por %p495_p12, %p494_p11 }
  0x1e   :  { %p497_p0 = pnand %p496_p13, %p490_p10 }
  0x20   :  { %500 = shalt.err (!%p497_p0)
}
  0x21   :  { %47 = dma.hbm_to_vmem [thread:$0]  %s579_s2, 1024, %s42_s28, [#allocation7], %s529_s20, %s529_s20, %s530_s21  }
  0x22   :  { %521 = dma.done.wait [#allocation4], 128  }
  0x23   :  { %522 = vsyncadd [#allocation4], 4294967168 }
  0x24   :  { %523 = dma.done.wait [#allocation7], 2048  }
  0x25   :  { %524 = vsyncadd [#allocation7], 4294965248  ;;  %v532_v0 = vmov 0.0   ;;  %vm533_vm0 = vmmov 0   ;;  %v423_v1 = vld [vmem:[#allocation6 + $0x38] sm:$0xff]   ;;  %v424_v2 = vld [vmem:[#allocation6 + $0x30] sm:$0xff]  }
  0x26   :  { %373 = vmatprep.subr.bf16.mxu0 %v532_v0  ;;  %389 = vmatprep.mubr.msk.bf16.mxu0 %vm533_vm0, %v532_v0  ;;  %v425_v3 = vld [vmem:[#allocation6 + $0x28] sm:$0xff]   ;;  %v432_v4 = vld [vmem:[#allocation8 + $0x38] sm:$0xff]   ;;  %v426_v5 = vld [vmem:[#allocation6 + $0x20] sm:$0xff]   ;;  %s534_s5 = smov [#allocation9]  }
  0x27   :  { %393 = vmatprep.subr.bf16.mxu1 %v532_v0  ;;  %409 = vmatprep.mubr.msk.bf16.mxu1 %vm533_vm0, %v532_v0  ;;  %v433_v6 = vld [vmem:[#allocation8 + $0x30] sm:$0xff]   ;;  %v427_v7 = vld [vmem:[#allocation6 + $0x18] sm:$0xff]   ;;  %v434_v8 = vld [vmem:[#allocation8 + $0x28] sm:$0xff]   ;;  %s314_s6 = sshll.u32 %s534_s5, 4  ;;  %s315_s6 = int_to_ptr.vmem [resolvable:$true] %s314_s6 }
  0x28   :  { %374 = vmatpush3.bf16.msra.mxu0 %v423_v1  ;;  %394 = vmatpush3.bf16.msra.mxu1 %v432_v4  ;;  %v428_v9 = vld [vmem:[#allocation6 + $0x10] sm:$0xff]   ;;  %v435_v10 = vld [vmem:[#allocation8 + $0x20] sm:$0xff]   ;;  %v429_v11 = vld [vmem:[#allocation6 + $0x8] sm:$0xff]   ;;  %s501_s7 = scalar_lea.vmem %s315_s6, 256  ;;  %p506_p2 = scmp.lt.s32.totalorder %s315_s6, %s315_s6 }
  0x29   :  { %375 = vmatprep.subr.bf16.mxu0 %v532_v0  ;;  %395 = vmatprep.subr.bf16.mxu1 %v532_v0  ;;  %v430_v12 = vld [vmem:[#allocation6] sm:$0xff]   ;;  %v431_v13 = vld [vmem:[#allocation3] sm:$0xff]   ;;  %v437_v15 = vld [vmem:[#allocation8 + $0x10] sm:$0xff]   ;;  %p502_p1 = scmp.ne.s32.totalorder %s315_s6, %s501_s7  ;;  %p507_p3 = scmp.lt.s32.totalorder %s501_s7, %s501_s7 }
  0x2a   :  { %v436_v14 = vld [vmem:[#allocation8 + $0x18] sm:$0xff]   ;;  %v438_v16 = vld [vmem:[#allocation8 + $0x8] sm:$0xff]   ;;  %v439_v17 = vld [vmem:[#allocation8] sm:$0xff]  }
  0x2b   :  { %v338_v24 = vld [vmem:[%s580_s3] ss:$0 sm:$0xff]  ;;  %p508_p4 = por %p507_p3, %p506_p2 }
  0x2c   :  { %376 = vmatpush3.bf16.msra.mxu0 %v424_v2  ;;  %396 = vmatpush3.bf16.msra.mxu1 %v433_v6 }
  0x2d   :  { %377 = vmatprep.subr.bf16.mxu0 %v532_v0  ;;  %397 = vmatprep.subr.bf16.mxu1 %v532_v0  ;;  %p509_p5 = pnand %p508_p4, %p502_p1 }
  0x30   :  { %378 = vmatpush3.bf16.msra.mxu0 %v425_v3  ;;  %398 = vmatpush3.bf16.msra.mxu1 %v434_v8 }
  0x31   :  { %379 = vmatprep.subr.bf16.mxu0 %v532_v0  ;;  %399 = vmatprep.subr.bf16.mxu1 %v532_v0 }
  0x34   :  { %380 = vmatpush3.bf16.msra.mxu0 %v426_v5  ;;  %400 = vmatpush3.bf16.msra.mxu1 %v435_v10 }
  0x35   :  { %381 = vmatprep.subr.bf16.mxu0 %v532_v0  ;;  %401 = vmatprep.subr.bf16.mxu1 %v532_v0 }
  0x38   :  { %382 = vmatpush3.bf16.msra.mxu0 %v427_v7  ;;  %402 = vmatpush3.bf16.msra.mxu1 %v436_v14 }
  0x39   :  { %383 = vmatprep.subr.bf16.mxu0 %v532_v0  ;;  %403 = vmatprep.subr.bf16.mxu1 %v532_v0 }
  0x3c   :  { %384 = vmatpush3.bf16.msra.mxu0 %v428_v9  ;;  %404 = vmatpush3.bf16.msra.mxu1 %v437_v15 }
  0x3d   :  { %385 = vmatprep.subr.bf16.mxu0 %v532_v0  ;;  %405 = vmatprep.subr.bf16.mxu1 %v532_v0 }
  0x40   :  { %386 = vmatpush3.bf16.msra.mxu0 %v429_v11  ;;  %406 = vmatpush3.bf16.msra.mxu1 %v438_v16 }
  0x41   :  { %387 = vmatprep.subr.bf16.mxu0 %v532_v0  ;;  %407 = vmatprep.subr.bf16.mxu1 %v532_v0 }
  0x44   :  { %388 = vmatpush3.bf16.msra.mxu0 %v430_v12  ;;  %408 = vmatpush3.bf16.msra.mxu1 %v439_v17 }
  0x47   :  { %390 = vmatmul.mubr.bf16.vlgmr.msra.gmra.mxu0 %v431_v13 }
 0x107   :  { %v170_v18 = vpop.f32.mrf.mxu0 }
 0x109   :  { %v391_v19 = vpop.f32.mrf.mxu0 }
 0x10b   :  { %v173_v20 = vpop.f32.mrf.mxu0 }
 0x10c   :  { %v353_v21 = vpack.c.bf16 %v173_v20, %v170_v18 }
 0x10d   :  { %v392_v22 = vpop.f32.mrf.mxu0 }
 0x10e   :  { %354 = vst [vmem:[#allocation2] sm:$0xff] %v353_v21  }
 0x115   :  { %v440_v23 = vld [vmem:[#allocation2] sm:$0xff]  }
 0x116   :  { %410 = vmatmul.mubr.bf16.vlgmr.msra.gmra.mxu1 %v440_v23 }
 0x1d6   :  { %v300_v25 = vpop.f32.mrf.mxu1 }
 0x1d7   :  { %v301_v26 = vadd.f32 %v338_v24, %v300_v25 }
 0x1d8   :  { %v411_v27 = vpop.f32.mrf.mxu1 }
 0x1d9   :  { %307 = vst [vmem:[#allocation9] sm:$0xff] %v301_v26 }
 0x1da   :  { %v303_v28 = vpop.f32.mrf.mxu1 }
 0x1db   :  { %v304_v29 = vadd.f32 %v338_v24, %v303_v28 }
 0x1dc   :  { %v412_v30 = vpop.f32.mrf.mxu1 }
 0x1dd   :  { %308 = vst [vmem:[#allocation9 + $0x8] sm:$0xff] %v304_v29 }
 0x1de   :  { %512 = shalt.err (!%p509_p5)
}
 0x1df   :  { %s535_s8 = smov 128   ;;  %s536_s3 = smov 8  }
 0x1e0   :  { %320 = dma.vmem_to_hbm [thread:$0]  %s315_s6, 256, %s581_s4, [#allocation5], %s535_s8, %s535_s8, %s536_s3  }
 0x1e1   :  { %525 = dma.done.wait [#allocation5], 256  }
 0x1e2   :  { %526 = vsyncadd [#allocation5], 4294967040 }
 0x1e3   :  { %324 = vsyncpa [#allocation4], 1 }
 0x1e4   :  { %325 = vsyncpa [#allocation7], 1 }
 0x1e5   :  { %326 = vsyncpa [#allocation5], 1 }

</bundles_post_ra>
